<compile_context>
chip_gen: v6e
topology: v6e:2x2x1
jax: 0.10.0
libtpu: 0.0.40
codegen_flags: <defaults>
</compile_context>

<pallas_src>
import functools

import jax
import jax.numpy as jnp
from jax.experimental import pallas as pl
from jax.experimental.pallas import tpu as pltpu

KERNEL_SIZES = (3, 15)   # module default kernel_sizes=[3, 15]
DILATION = 1


def _round_up(n, m):
    return ((n + m - 1) // m) * m


def ddsc_kernel(x_ref, wpw_ref, weff_ref, o_ref, *, dilation, relu, l_pad):
    """One batch tile per grid step.

    x_ref:    (C_in, TB*L_pad)   zero-haloed, batch-flattened input slab
    wpw_ref:  (C_out, C_in)      pointwise (1x1 conv) weight
    weff_ref: (C_out, K)         gate-folded effective depthwise weight (f32)
    o_ref:    (TB, C_out, L_pad) output tile (NCW per batch element)
    """
    TB = o_ref.shape[0]
    C_out, K = weff_ref.shape
    N = x_ref.shape[1]
    center = (K - 1) // 2

    # ---- pointwise 1x1 conv: ONE wide MXU matmul for the whole batch tile ----
    pw = jnp.dot(wpw_ref[...], x_ref[...], preferred_element_type=jnp.float32)
    if relu:  # intermediate_nonlinearity=True path
        pw = jnp.maximum(pw, 0.0)

    # ---- fused depthwise conv (gate already folded into weff) ----------------
    # Each batch element carries a >= halo zero margin inside its L_pad window,
    # so a plain lane rotation of the whole slab is exact 'same' zero padding:
    # taps that would read past the valid length (or into the neighbouring
    # batch element / wrap around the slab) land on zeros.  Per tap:
    # roll (XLU slot) + mul + add -- no masks, no selects.
    w_col = [weff_ref[:, t:t + 1] for t in range(K)]      # (C_out, 1), hoisted
    acc = pw * w_col[center]                               # center tap, d == 0
    for t in range(K):
        d = (t - center) * dilation
        if d == 0:
            continue
        # shifted[n] = pw[n + d]
        acc = acc + pltpu.roll(pw, (-d) % N, 1) * w_col[t]

    # Lane-dense stores: L_pad is a multiple of 128 and every slice sits on a
    # 128-lane boundary, so these are unmasked vst's.
    # TODO(synk): switch to lax.fori_loop(unroll=True) if TB ever grows large
    # enough for the unrolled store sequence to pressure the scheduler.
    for b in range(TB):
        o_ref[b] = acc[:, b * l_pad:(b + 1) * l_pad].astype(o_ref.dtype)


def _pick_batch_tile(B, C_in, C_out, L_pad, in_bytes, out_bytes,
                     budget_bytes=24 * 1024 * 1024):
    """VMEM-aware batch tile: largest divisor of B whose per-step footprint
    (double-buffered in/out tiles + f32 compute slabs) fits the budget, while
    keeping the grid >= 2 steps so v7x can use both TensorCores."""
    def step_bytes(tb):
        x_tile = C_in * tb * L_pad * in_bytes
        o_tile = tb * C_out * L_pad * out_bytes
        slabs = 2 * C_out * tb * L_pad * 4       # pw + acc in f32
        return 2 * (x_tile + o_tile) + slabs
    best = 1
    for tb in sorted((d for d in range(1, B + 1) if B % d == 0), reverse=True):
        if B > 1 and B // tb < 2:
            continue                             # keep >= 2 grid steps
        if step_bytes(tb) <= budget_bytes:
            best = tb
            break
    return best


def dynamic_depth_separable_conv1d(x, w_pointwise, w_depthwise, gate,
                                   kernel_sizes=KERNEL_SIZES,
                                   dilation=DILATION,
                                   intermediate_nonlinearity=False,
                                   batch_tile=None,
                                   vmem_limit_bytes=48 * 1024 * 1024):
    """x: (B, C_in, L) PyTorch NCW.  Returns (B, C_out, L).

    w_pointwise:  (C_out, C_in)            -- PyTorch Conv1d weight, squeezed
    w_depthwise:  tuple of (C_out, k_i)    -- PyTorch grouped Conv1d weights, squeezed
    gate:         (num_kernels,)           -- raw dynamic_gate parameter
    """
    B, C_in, L = x.shape
    C_out = w_pointwise.shape[0]
    assert w_pointwise.shape == (C_out, C_in), "pointwise weight must be (C_out, C_in)"
    num_kernels = len(kernel_sizes)
    assert len(w_depthwise) == num_kernels
    assert gate.shape == (num_kernels,)

    k_max = max(kernel_sizes)
    assert k_max % 2 == 1, "kernel sizes must be odd (center-aligned 'same' padding)"
    halo = (k_max - 1) // 2 * dilation

    # ---- fold softmax(gate) + all depthwise kernels into one effective filter
    # (exact: gated sum of 'same'-padded, center-aligned linear convs over the
    # same pointwise output == one conv with the gate-weighted, center-aligned
    # sum of the kernels).
    g = jax.nn.softmax(gate.astype(jnp.float32))
    w_eff = jnp.zeros((C_out, k_max), jnp.float32)
    for i, (k, wdw) in enumerate(zip(kernel_sizes, w_depthwise)):
        assert wdw.shape == (C_out, k), \
            "depthwise weight must be (C_out, k) (PyTorch (C_out, 1, k) squeezed)"
        assert (k_max - k) % 2 == 0, "kernel sizes must share center alignment"
        off = (k_max - k) // 2
        w_eff = w_eff.at[:, off:off + k].add(g[i] * wdw.astype(jnp.float32))

    # ---- lane padding + zero halo --------------------------------------------
    # L_pad is a multiple of 128 (lane-dense loads/stores) and >= L + halo so
    # the in-kernel rolls need no boundary masks.
    L_pad = _round_up(L + halo, 128)

    out_dtype = x.dtype
    if batch_tile is None:
        batch_tile = _pick_batch_tile(B, C_in, C_out, L_pad,
                                      jnp.dtype(x.dtype).itemsize,
                                      jnp.dtype(out_dtype).itemsize)
    assert B % batch_tile == 0

    # (B, C_in, L) -> zero-pad L -> (C_in, B*L_pad) slab (batch flattened into lanes)
    x_p = jnp.pad(x, ((0, 0), (0, 0), (0, L_pad - L)))
    x_flat = jnp.transpose(x_p, (1, 0, 2)).reshape(C_in, B * L_pad)
    w_pw = w_pointwise.astype(x.dtype)          # bf16-friendly MXU operand

    kernel = functools.partial(ddsc_kernel, dilation=dilation,
                               relu=intermediate_nonlinearity, l_pad=L_pad)

    out_p = pl.pallas_call(
        kernel,
        out_shape=jax.ShapeDtypeStruct((B, C_out, L_pad), out_dtype),
        grid_spec=pltpu.PrefetchScalarGridSpec(
            num_scalar_prefetch=0,
            grid=(B // batch_tile,),
            in_specs=[
                pl.BlockSpec((C_in, batch_tile * L_pad), lambda i: (0, i)),
                # Invariant weights (constant index_map); tiny, so the default
                # double-buffering costs only a few KiB of VMEM.
                pl.BlockSpec((C_out, C_in), lambda i: (0, 0)),
                pl.BlockSpec((C_out, k_max), lambda i: (0, 0)),
            ],
            out_specs=pl.BlockSpec((batch_tile, C_out, L_pad),
                                   lambda i: (i, 0, 0)),
        ),
        compiler_params=pltpu.CompilerParams(
            dimension_semantics=("parallel",),   # independent batch tiles -> both TCs on v7x
            vmem_limit_bytes=vmem_limit_bytes,   # raise v5e's 16 MiB default, headroom on v7x
        ),
    )(x_flat, w_pw, w_eff)

    return out_p[:, :, :L]


def reference(x, w_pointwise, w_depthwise, gate,
              kernel_sizes=KERNEL_SIZES, dilation=DILATION,
              intermediate_nonlinearity=False):
    """Plain-JAX reference mirroring the PyTorch forward pass (no folding)."""
    B, C_in, L = x.shape
    pw = jnp.einsum('oc,bcl->bol', w_pointwise, x)             # pointwise 1x1 conv
    if intermediate_nonlinearity:
        pw = jnp.maximum(pw, 0.0)
    g = jax.nn.softmax(gate)
    out = jnp.zeros_like(pw)
    for i, (k, wdw) in enumerate(zip(kernel_sizes, w_depthwise)):
        p = (k - 1) // 2 * dilation
        pw_pad = jnp.pad(pw, ((0, 0), (0, 0), (p, p)))
        y = jnp.zeros_like(pw)
        for t in range(k):
            y = y + wdw[:, t][None, :, None] * pw_pad[:, :, t * dilation:t * dilation + L]
        out = out + g[i] * y
    return out


if __name__ == "__main__":
    # L deliberately not a multiple of 128: exercises the lane padding / halo path.
    B, C_in, C_out, L = 2, 4, 8, 120

    key = jax.random.PRNGKey(0)
    k1, k2, k3, k4, k5 = jax.random.split(key, 5)

    x = jax.random.normal(k1, (B, C_in, L), jnp.float32)
    # Parameters match the nn.Module (weights squeezed from PyTorch layouts):
    #   pointwise:  Conv1d(C_in, C_out, 1, bias=False)        -> (C_out, C_in)
    #   depthwise:  Conv1d(C_out, C_out, k, groups=C_out)     -> (C_out, k) each
    #   dynamic_gate: (num_kernels,)
    w_pw = jax.random.normal(k2, (C_out, C_in), jnp.float32) * 0.5
    w_dw0 = jax.random.normal(k3, (C_out, KERNEL_SIZES[0]), jnp.float32) * 0.5
    w_dw1 = jax.random.normal(k4, (C_out, KERNEL_SIZES[1]), jnp.float32) * 0.5
    gate = jax.random.normal(k5, (len(KERNEL_SIZES),), jnp.float32) * 0.3

    # Validate both the plain and the intermediate_nonlinearity (ReLU) paths.
    for relu in (False, True):
        out = dynamic_depth_separable_conv1d(
            x, w_pw, (w_dw0, w_dw1), gate, intermediate_nonlinearity=relu)
        out = jax.block_until_ready(out)
        ref = reference(x, w_pw, (w_dw0, w_dw1), gate,
                        intermediate_nonlinearity=relu)
        assert out.shape == (B, C_out, L)
        err = jnp.max(jnp.abs(out - ref))
        assert jnp.allclose(out, ref, atol=1e-4, rtol=1e-4), \
            f"mismatch vs reference (relu={relu}), max err = {err}"

    print("KERNEL_OK")
</pallas_src>

<mosaic_0001>
module attributes {stable_mosaic.version = 11 : i64} {
  func.func @ddsc_kernel(%arg0: i32, %arg1: memref<4x128xf32, #tpu.memory_space<vmem>>, %arg2: memref<8x4xf32, #tpu.memory_space<vmem>>, %arg3: memref<8x15xf32, #tpu.memory_space<vmem>>, %arg4: memref<1x8x128xf32, #tpu.memory_space<vmem>>) attributes {dimension_semantics = [#tpu.dimension_semantics<parallel>], iteration_bounds = array<i64: 2>, scalar_prefetch = 0 : i64, scratch_operands = 0 : i64, tpu.core_type = #tpu.core_type<tc>, window_params = [{transform_indices = @transform_0, window_bounds = array<i64: 4, 128>}, {pipeline_mode = #tpu.pipeline_mode<synchronous>, transform_indices = @transform_1, window_bounds = array<i64: 8, 4>}, {pipeline_mode = #tpu.pipeline_mode<synchronous>, transform_indices = @transform_2, window_bounds = array<i64: 8, 15>}, {transform_indices = @transform_3, window_bounds = array<i64: 1, 8, 128>}]} {
    %c0 = arith.constant 0 : index
    %c0_0 = arith.constant 0 : index
    %0 = vector.load %arg2[%c0, %c0_0] : memref<8x4xf32, #tpu.memory_space<vmem>>, vector<8x4xf32>
    %c0_1 = arith.constant 0 : index
    %c0_2 = arith.constant 0 : index
    %1 = vector.load %arg1[%c0_1, %c0_2] : memref<4x128xf32, #tpu.memory_space<vmem>>, vector<4x128xf32>
    %cst = arith.constant dense<0.000000e+00> : vector<8x128xf32>
    %2 = tpu.matmul %0, %1, %cst {dimension_numbers = #tpu.dot_dimension_numbers<[1], [0], [0], [1], [0, 0, 1, 1], [], []>} : vector<8x4xf32>, vector<4x128xf32>, vector<8x128xf32> -> vector<8x128xf32>
    %c0_3 = arith.constant 0 : index
    %c0_4 = arith.constant 0 : index
    %3 = vector.load %arg3[%c0_3, %c0_4] : memref<8x15xf32, #tpu.memory_space<vmem>>, vector<8x1xf32>
    %c0_5 = arith.constant 0 : index
    %c1 = arith.constant 1 : index
    %4 = vector.load %arg3[%c0_5, %c1] : memref<8x15xf32, #tpu.memory_space<vmem>>, vector<8x1xf32>
    %c0_6 = arith.constant 0 : index
    %c2 = arith.constant 2 : index
    %5 = vector.load %arg3[%c0_6, %c2] : memref<8x15xf32, #tpu.memory_space<vmem>>, vector<8x1xf32>
    %c0_7 = arith.constant 0 : index
    %c3 = arith.constant 3 : index
    %6 = vector.load %arg3[%c0_7, %c3] : memref<8x15xf32, #tpu.memory_space<vmem>>, vector<8x1xf32>
    %c0_8 = arith.constant 0 : index
    %c4 = arith.constant 4 : index
    %7 = vector.load %arg3[%c0_8, %c4] : memref<8x15xf32, #tpu.memory_space<vmem>>, vector<8x1xf32>
    %c0_9 = arith.constant 0 : index
    %c5 = arith.constant 5 : index
    %8 = vector.load %arg3[%c0_9, %c5] : memref<8x15xf32, #tpu.memory_space<vmem>>, vector<8x1xf32>
    %c0_10 = arith.constant 0 : index
    %c6 = arith.constant 6 : index
    %9 = vector.load %arg3[%c0_10, %c6] : memref<8x15xf32, #tpu.memory_space<vmem>>, vector<8x1xf32>
    %c0_11 = arith.constant 0 : index
    %c7 = arith.constant 7 : index
    %10 = vector.load %arg3[%c0_11, %c7] : memref<8x15xf32, #tpu.memory_space<vmem>>, vector<8x1xf32>
    %c0_12 = arith.constant 0 : index
    %c8 = arith.constant 8 : index
    %11 = vector.load %arg3[%c0_12, %c8] : memref<8x15xf32, #tpu.memory_space<vmem>>, vector<8x1xf32>
    %c0_13 = arith.constant 0 : index
    %c9 = arith.constant 9 : index
    %12 = vector.load %arg3[%c0_13, %c9] : memref<8x15xf32, #tpu.memory_space<vmem>>, vector<8x1xf32>
    %c0_14 = arith.constant 0 : index
    %c10 = arith.constant 10 : index
    %13 = vector.load %arg3[%c0_14, %c10] : memref<8x15xf32, #tpu.memory_space<vmem>>, vector<8x1xf32>
    %c0_15 = arith.constant 0 : index
    %c11 = arith.constant 11 : index
    %14 = vector.load %arg3[%c0_15, %c11] : memref<8x15xf32, #tpu.memory_space<vmem>>, vector<8x1xf32>
    %c0_16 = arith.constant 0 : index
    %c12 = arith.constant 12 : index
    %15 = vector.load %arg3[%c0_16, %c12] : memref<8x15xf32, #tpu.memory_space<vmem>>, vector<8x1xf32>
    %c0_17 = arith.constant 0 : index
    %c13 = arith.constant 13 : index
    %16 = vector.load %arg3[%c0_17, %c13] : memref<8x15xf32, #tpu.memory_space<vmem>>, vector<8x1xf32>
    %c0_18 = arith.constant 0 : index
    %c14 = arith.constant 14 : index
    %17 = vector.load %arg3[%c0_18, %c14] : memref<8x15xf32, #tpu.memory_space<vmem>>, vector<8x1xf32>
    %18 = vector.broadcast %10 : vector<8x1xf32> to vector<8x128xf32>
    %19 = arith.mulf %2, %18 : vector<8x128xf32>
    %c7_i32 = arith.constant 7 : i32
    %20 = tpu.dynamic_rotate %2 by %c7_i32 dim 1 : vector<8x128xf32>, i32 -> vector<8x128xf32>
    %21 = vector.broadcast %3 : vector<8x1xf32> to vector<8x128xf32>
    %22 = arith.mulf %20, %21 : vector<8x128xf32>
    %23 = arith.addf %19, %22 : vector<8x128xf32>
    %c6_i32 = arith.constant 6 : i32
    %24 = tpu.dynamic_rotate %2 by %c6_i32 dim 1 : vector<8x128xf32>, i32 -> vector<8x128xf32>
    %25 = vector.broadcast %4 : vector<8x1xf32> to vector<8x128xf32>
    %26 = arith.mulf %24, %25 : vector<8x128xf32>
    %27 = arith.addf %23, %26 : vector<8x128xf32>
    %c5_i32 = arith.constant 5 : i32
    %28 = tpu.dynamic_rotate %2 by %c5_i32 dim 1 : vector<8x128xf32>, i32 -> vector<8x128xf32>
    %29 = vector.broadcast %5 : vector<8x1xf32> to vector<8x128xf32>
    %30 = arith.mulf %28, %29 : vector<8x128xf32>
    %31 = arith.addf %27, %30 : vector<8x128xf32>
    %c4_i32 = arith.constant 4 : i32
    %32 = tpu.dynamic_rotate %2 by %c4_i32 dim 1 : vector<8x128xf32>, i32 -> vector<8x128xf32>
    %33 = vector.broadcast %6 : vector<8x1xf32> to vector<8x128xf32>
    %34 = arith.mulf %32, %33 : vector<8x128xf32>
    %35 = arith.addf %31, %34 : vector<8x128xf32>
    %c3_i32 = arith.constant 3 : i32
    %36 = tpu.dynamic_rotate %2 by %c3_i32 dim 1 : vector<8x128xf32>, i32 -> vector<8x128xf32>
    %37 = vector.broadcast %7 : vector<8x1xf32> to vector<8x128xf32>
    %38 = arith.mulf %36, %37 : vector<8x128xf32>
    %39 = arith.addf %35, %38 : vector<8x128xf32>
    %c2_i32 = arith.constant 2 : i32
    %40 = tpu.dynamic_rotate %2 by %c2_i32 dim 1 : vector<8x128xf32>, i32 -> vector<8x128xf32>
    %41 = vector.broadcast %8 : vector<8x1xf32> to vector<8x128xf32>
    %42 = arith.mulf %40, %41 : vector<8x128xf32>
    %43 = arith.addf %39, %42 : vector<8x128xf32>
    %c1_i32 = arith.constant 1 : i32
    %44 = tpu.dynamic_rotate %2 by %c1_i32 dim 1 : vector<8x128xf32>, i32 -> vector<8x128xf32>
    %45 = vector.broadcast %9 : vector<8x1xf32> to vector<8x128xf32>
    %46 = arith.mulf %44, %45 : vector<8x128xf32>
    %47 = arith.addf %43, %46 : vector<8x128xf32>
    %c127_i32 = arith.constant 127 : i32
    %48 = tpu.dynamic_rotate %2 by %c127_i32 dim 1 : vector<8x128xf32>, i32 -> vector<8x128xf32>
    %49 = vector.broadcast %11 : vector<8x1xf32> to vector<8x128xf32>
    %50 = arith.mulf %48, %49 : vector<8x128xf32>
    %51 = arith.addf %47, %50 : vector<8x128xf32>
    %c126_i32 = arith.constant 126 : i32
    %52 = tpu.dynamic_rotate %2 by %c126_i32 dim 1 : vector<8x128xf32>, i32 -> vector<8x128xf32>
    %53 = vector.broadcast %12 : vector<8x1xf32> to vector<8x128xf32>
    %54 = arith.mulf %52, %53 : vector<8x128xf32>
    %55 = arith.addf %51, %54 : vector<8x128xf32>
    %c125_i32 = arith.constant 125 : i32
    %56 = tpu.dynamic_rotate %2 by %c125_i32 dim 1 : vector<8x128xf32>, i32 -> vector<8x128xf32>
    %57 = vector.broadcast %13 : vector<8x1xf32> to vector<8x128xf32>
    %58 = arith.mulf %56, %57 : vector<8x128xf32>
    %59 = arith.addf %55, %58 : vector<8x128xf32>
    %c124_i32 = arith.constant 124 : i32
    %60 = tpu.dynamic_rotate %2 by %c124_i32 dim 1 : vector<8x128xf32>, i32 -> vector<8x128xf32>
    %61 = vector.broadcast %14 : vector<8x1xf32> to vector<8x128xf32>
    %62 = arith.mulf %60, %61 : vector<8x128xf32>
    %63 = arith.addf %59, %62 : vector<8x128xf32>
    %c123_i32 = arith.constant 123 : i32
    %64 = tpu.dynamic_rotate %2 by %c123_i32 dim 1 : vector<8x128xf32>, i32 -> vector<8x128xf32>
    %65 = vector.broadcast %15 : vector<8x1xf32> to vector<8x128xf32>
    %66 = arith.mulf %64, %65 : vector<8x128xf32>
    %67 = arith.addf %63, %66 : vector<8x128xf32>
    %c122_i32 = arith.constant 122 : i32
    %68 = tpu.dynamic_rotate %2 by %c122_i32 dim 1 : vector<8x128xf32>, i32 -> vector<8x128xf32>
    %69 = vector.broadcast %16 : vector<8x1xf32> to vector<8x128xf32>
    %70 = arith.mulf %68, %69 : vector<8x128xf32>
    %71 = arith.addf %67, %70 : vector<8x128xf32>
    %c121_i32 = arith.constant 121 : i32
    %72 = tpu.dynamic_rotate %2 by %c121_i32 dim 1 : vector<8x128xf32>, i32 -> vector<8x128xf32>
    %73 = vector.broadcast %17 : vector<8x1xf32> to vector<8x128xf32>
    %74 = arith.mulf %72, %73 : vector<8x128xf32>
    %75 = arith.addf %71, %74 : vector<8x128xf32>
    %c0_19 = arith.constant 0 : index
    %c0_20 = arith.constant 0 : index
    %c0_21 = arith.constant 0 : index
    %76 = vector.load %arg4[%c0_19, %c0_20, %c0_21] : memref<1x8x128xf32, #tpu.memory_space<vmem>>, vector<1x8x128xf32>
    %77 = vector.shape_cast %76 : vector<1x8x128xf32> to vector<8x128xf32>
    %78 = vector.shape_cast %75 : vector<8x128xf32> to vector<1x8x128xf32>
    tpu.vector_store %arg4[%c0_19, %c0_20, %c0_21], %78 {strides = array<i32>} : memref<1x8x128xf32, #tpu.memory_space<vmem>>, vector<1x8x128xf32>,
    return
  }
  func.func @transform_0(%arg0: i32) -> (i32, i32) {
    %c0_i32 = arith.constant 0 : i32
    %c0_i32_0 = arith.constant 0 : i32
    return %c0_i32, %arg0 : i32, i32
  }
  func.func @transform_1(%arg0: i32) -> (i32, i32) {
    %c0_i32 = arith.constant 0 : i32
    %c0_i32_0 = arith.constant 0 : i32
    %c0_i32_1 = arith.constant 0 : i32
    return %c0_i32, %c0_i32_0 : i32, i32
  }
  func.func @transform_2(%arg0: i32) -> (i32, i32) {
    %c0_i32 = arith.constant 0 : i32
    %c0_i32_0 = arith.constant 0 : i32
    %c0_i32_1 = arith.constant 0 : i32
    return %c0_i32, %c0_i32_0 : i32, i32
  }
  func.func @transform_3(%arg0: i32) -> (i32, i32, i32) {
    %c0_i32 = arith.constant 0 : i32
    %c0_i32_0 = arith.constant 0 : i32
    %c0_i32_1 = arith.constant 0 : i32
    return %arg0, %c0_i32, %c0_i32_0 : i32, i32, i32
  }
}

</mosaic_0001>

<bundles_post_ra>
// kernel: tpu_custom_call.1
= control target key start
LH: loop header
LB: loop body
LE: loop exit
PB: predicated region body
PF: predicated region fallthrough
CT: control target
= control target key end

     0   :  { %8 = vsyncpa [#allocation3], 0  ;;  %s852_s0 = inlined_call_operand.vmem [shape: f32[4,256], index: 0, kind: input, shape index: {}]   ;;  %s853_s1 = inlined_call_operand.vmem [shape: f32[8,4], index: 1, kind: input, shape index: {}]   ;;  %s854_s2 = inlined_call_operand.hbm [shape: f32[8,15], index: 2, kind: input, shape index: {}]   ;;  %s855_s3 = inlined_call_operand.hbm [shape: f32[2,8,128], index: 3, kind: output, shape index: {}]  }
   0x1   :  { %9 = vsyncpa [#allocation4], 0 }
   0x2   :  { %11 = vsyncpa [#allocation4 + $0x1], 0  ;;  %s727_s12 = smov 0   ;;  %s729_s13 = smov 0  }
   0x3   :  { %s731_s14 = smov 0   ;;  %s733_s15 = smov 0  }
   0x4 LB: > { %s748_s16 = sadd.s32 4294967295, %s672_s15   ;;  %s464_s17 = sadd.s32 4294967294, %s672_s15   ;;  %s672_s15 = sphi %s733_s15, %s863_s15   ;;  %s668_s14 = sphi %s731_s14, %s862_s14   ;;  %s664_s13 = sphi %s729_s13, %s861_s13   ;;  %s660_s12 = sphi %s727_s12, %s860_s12  }
   0x5   : > { %s752_s18 = sadd.s32 1, %s672_s15   ;;  %s92_s19 = sadd.s32 1, %s668_s14 }
   0x6   : > { %s89_s20 = ssub.s32 %s672_s15, %s752_s18  ;;  %p102_p0 = scmp.ne.s32.totalorder %s668_s14, %s664_s13 }
   0x7   : > { %p90_p1 = scmp.eq.s32.totalorder %s89_s20, 0  ;;  %p103_p2 = scmp.eq.s32.totalorder %s748_s16, 1 }
   0x8   : > { %p108_p3 = scmp.ne.s32.totalorder %s664_s13, %s660_s12  ;;  %p109_p4 = scmp.eq.s32.totalorder %s464_s17, 1 }
   0x9   : > { %s763_s21 = scalar_select %p90_p1, %s668_s14, %s92_s19  }
   0xa   : > { %p765_p5 = por %p103_p2, %p102_p0  ;;  %p769_p6 = por %p109_p4, %p108_p3 }
   0xb   : > { %p465_p7 = scmp.ge.s32.totalorder %s672_s15, 1  ;;  %p116_p8 = scmp.lt.s32.totalorder %s672_s15, 3 }
   0xc   : > { %s857_s23 = scalar_select %p769_p6, 1, 0 }
   0xd   : > { %p499_p9 = scmp.eq.s32.totalorder %s748_s16, 0  ;;  %p776_p10 = pnand %p465_p7, %p116_p8 }
   0xe   : > { %s674_s25 = smov [#allocation2]  }
   0xf   : > { %s132_s26 = sshll.u32 %s674_s25, 4  ;;  %p491_p11 = pneg %p776_p10  ;;  %s133_s26 = int_to_ptr.vmem [resolvable:$true] %s132_s26 }
  0x10   : > { %s593_s27 = scalar_lea.vmem %s133_s26, 128  ;;  %p601_p3 = scmp.lt.s32.totalorder %s133_s26, %s133_s26 }
  0x11   : > { %p492_p12 = pnand %p499_p9, %p491_p11  ;;  %p594_p0 = scmp.ne.s32.totalorder %s133_s26, %s593_s27 }
  0x12   : > { %p602_p4 = scmp.lt.s32.totalorder %s593_s27, %s593_s27 }
  0x13   : > { %p584_p13 = pneg %p492_p12 }
  0x14   : > { %p603_p6 = por %p602_p4, %p601_p3 }
  0x15   : > { %p596_p1 = pnand %p594_p0, %p584_p13 }
  0x17   : > { %p597_p2 = pneg %p596_p1 }
  0x19   : > { %p604_p7 = pnand %p603_p6, %p597_p2 }
  0x1b   : > { %607 = shalt.err (!%p604_p7)
}
  0x1c   : > { %494 = dma.hbm_to_vmem [thread:$0]  (!%p492_p12), %s854_s2, 128, %s133_s26, [#allocation3]  }
  0x1d   : > { %152 = sbr.rel (%p776_p10) target bundleno = 411 (0x19b), region = 32 }
  0x22   : > { %651 = dma.done.wait (%p499_p9), [#allocation3], 128  }
  0x23   : > { %653 = vsyncadd (%p499_p9), [#allocation3], 4294967168  ;;  %p175_p8 = scmp.lt.s32.totalorder %s748_s16, 1  ;;  %v675_v0 = vmov 0.0   ;;  %vm676_vm0 = vmmov 0   ;;  %v677_v1 = vmov 7  }
  0x24   : > { %480 = vmatprep.subr.mxu0 %v675_v0  ;;  %482 = vmatprep.mubr.msk.f32.mxu0 %vm676_vm0, %v675_v0  ;;  %v678_v2 = vmov 1   ;;  %vm185_vm1 = vcmask 1043456   ;;  %vm181_vm2 = vcmask 31744   ;;  %v798_v3 = vld [vmem:[#allocation2] sm:$0xff]  ;;  %v679_v6 = vmov 0   ;;  %s689_s10 = smov 5  }
  0x25   : > { %s176_s30 = scalar_select %p175_p8, %s748_s16, 1  ;;  %566 = vset.pattern.permute.xlu0 %v677_v1  ;;  %568 = vset.pattern.permute.xlu1 %v678_v2  ;;  %v179_v5 = vld [vmem:[%s853_s1] sm:$0xff]  ;;  %v680_v7 = vmov 2   ;;  %v681_v8 = vmov 3   ;;  %v682_v9 = vmov 4   ;;  %v683_v10 = vmov 5  }
  0x26   : > { %262 = vperm.xlu0 %566, %v798_v3   ;;  %277 = vperm.xlu1 %568, %v798_v3   ;;  %v684_v11 = vmov 6   ;;  %v685_v12 = vmov 8   ;;  %v686_v13 = vmov 9   ;;  %v687_v14 = vmov 10   ;;  %s690_s11 = smov 7   ;;  %s691_s17 = smov 4  }
  0x27   : > { %s471_s4 = sshll.u32 %s176_s30, 2  ;;  %v688_v15 = vmov 14   ;;  %s692_s19 = smov 6   ;;  %v695_v18 = vmov 11   ;;  %v697_v19 = vmov 12   ;;  %v699_v20 = vmov 13  }
  0x28   : > { %s178_s7 = scalar_lea.vmem %s852_s0, %s471_s4  ;;  %s693_s20 = smov 3  }
  0x29   : > { %v180_v4 = vld [vmem:[%s178_s7] sm:$0xf]  ;;  %s694_s24 = smov 2   ;;  %s696_s25 = smov 1  }
  0x2a   : > { %481 = vmatpush3.msk.msra.mxu0 %vm185_vm1, %v180_v4  ;;  %567 = vset.pattern.permute.xlu0 %v679_v6  ;;  %s698_s26 = smov 127   ;;  %s700_s27 = smov 126  }
  0x2b   : > { %483 = vmatmul.mubr.msk.f32.vlgmr.msra.gmra.mxu0 %vm181_vm2, %v179_v5  ;;  %569 = vset.pattern.permute.xlu1 %v680_v7  ;;  %s701_s28 = smov 125   ;;  %s702_s29 = smov 124  }
  0x2c   : > { %269 = vperm.xlu0 %567, %v798_v3   ;;  %285 = vperm.xlu1 %569, %v798_v3   ;;  %s703_s30 = smov 122   ;;  %s704_s4 = smov 123  }
  0x2d   : > { %s705_s5 = smov 121   ;;  %s172_s6 = sand.u32 1, %s664_s13  }
  0x2e   : > { %s470_s7 = sshll.u32 %s172_s6, 3  ;;  %s475_s8 = sshll.u32 %s748_s16, 7 }
  0x2f   : > { %s174_s9 = scalar_lea.vmem [#allocation5], %s470_s7 }
  0x30   : > { %570 = vset.pattern.permute.xlu0 %v681_v8  ;;  %571 = vset.pattern.permute.xlu1 %v682_v9 }
  0x31   : > { %293 = vperm.xlu0 %570, %v798_v3   ;;  %301 = vperm.xlu1 %571, %v798_v3  }
  0x35   : > { %572 = vset.pattern.permute.xlu1 %v683_v10  ;;  %581 = vset.pattern.permute.xlu0 %v688_v15 }
  0x36   : > { %309 = vperm.xlu1 %572, %v798_v3  }
  0x3a   : > { %573 = vset.pattern.permute.xlu1 %v684_v11 }
  0x3b   : > { %317 = vperm.xlu1 %573, %v798_v3  }
  0x3f   : > { %574 = vset.pattern.permute.xlu1 %v685_v12 }
  0x40   : > { %325 = vperm.xlu1 %574, %v798_v3  }
  0x44   : > { %575 = vset.pattern.permute.xlu1 %v686_v13 }
  0x45   : > { %333 = vperm.xlu1 %575, %v798_v3  }
  0x49   : > { %576 = vset.pattern.permute.xlu1 %v687_v14 }
  0xa1   : > { %v278_v21 = vpop.permute.xlu1 %277  ;;  %v263_v26 = vpop.permute.xlu0 %262 }
  0xa7   : > { %v286_v22 = vpop.permute.xlu1 %285  ;;  %v270_v27 = vpop.permute.xlu0 %269 }
  0xac   : > { %v302_v23 = vpop.permute.xlu1 %301  ;;  %v294_v29 = vpop.permute.xlu0 %293 }
  0xb1   : > { %v310_v24 = vpop.permute.xlu1 %309 }
  0xb6   : > { %v318_v25 = vpop.permute.xlu1 %317 }
  0xbb   : > { %v326_v28 = vpop.permute.xlu1 %325 }
  0xc0   : > { %v334_v30 = vpop.permute.xlu1 %333 }
  0xeb   : > { %v255_v16 = vpop.f32.mrf.mxu0 }
  0xec   : > { %282 = vrot.lane.b32.xlu0 %v255_v16, %s689_s10  ;;  %266 = vrot.lane.b32.xlu1 %v255_v16, %s690_s11  ;;  %v265_v37 = vmul.f32 %v263_v26, %v255_v16  ;;  %s393_s10 = sshll.u32 %s174_s9, 4  ;;  %s394_s10 = int_to_ptr.vmem [resolvable:$true] %s393_s10 }
  0xed   : > { %v484_v17 = vpop.f32.mrf.mxu0 }
  0xf0   : > { %290 = vrot.lane.b32.xlu0 %v255_v16, %s691_s17  ;;  %274 = vrot.lane.b32.xlu1 %v255_v16, %s692_s19  ;;  %s391_s19 = scalar_lea.hbm %s855_s3, %s475_s8 }
  0xf4   : > { %298 = vrot.lane.b32.xlu0 %v255_v16, %s693_s20  ;;  %341 = vperm.xlu1 %576, %v798_v3   ;;  %s380_s20 = scalar_lea.sflag [#allocation4], %s172_s6 }
  0xf8   : > { %306 = vrot.lane.b32.xlu0 %v255_v16, %s694_s24  ;;  %577 = vset.pattern.permute.xlu1 %v695_v18  ;;  %s608_s24 = scalar_lea.vmem %s394_s10, 128 }
  0xf9   : > { %349 = vperm.xlu1 %577, %v798_v3   ;;  %p609_p6 = scmp.ne.s32.totalorder %s394_s10, %s608_s24 }
  0xfb   : > { %p610_p9 = pnand %p609_p6, %p765_p5 }
  0xfc   : > { %314 = vrot.lane.b32.xlu0 %v255_v16, %s696_s25  ;;  %s706_s25 = smov [#allocation5]  }
  0xfd   : > { %578 = vset.pattern.permute.xlu1 %v697_v19  ;;  %p611_p10 = pneg %p610_p9 }
  0xfe   : > { %357 = vperm.xlu1 %578, %v798_v3  }
 0x100   : > { %322 = vrot.lane.b32.xlu0 %v255_v16, %s698_s26  ;;  %s612_s26 = sshll.u32 %s706_s25, 4  ;;  %s613_s26 = int_to_ptr.vmem [resolvable:$false] %s612_s26 }
 0x101   : > { %s614_s16 = scalar_lea.vmem %s613_s26, 256  ;;  %p615_p11 = scmp.lt.s32.totalorder %s394_s10, %s613_s26 }
 0x102   : > { %579 = vset.pattern.permute.xlu1 %v699_v20  ;;  %p616_p12 = scmp.lt.s32.totalorder %s614_s16, %s608_s24 }
 0x103   : > { %365 = vperm.xlu1 %579, %v798_v3  }
 0x104   : > { %330 = vrot.lane.b32.xlu0 %v255_v16, %s700_s27  ;;  %p617_p13 = por %p616_p12, %p615_p11 }
 0x106   : > { %p618_p0 = pnand %p617_p13, %p611_p10 }
 0x107   : > { %580 = vset.pattern.permute.xlu1 %v688_v15 }
 0x108   : > { %338 = vrot.lane.b32.xlu0 %v255_v16, %s701_s28  ;;  %373 = vperm.xlu1 %580, %v798_v3  }
 0x10c   : > { %346 = vrot.lane.b32.xlu0 %v255_v16, %s702_s29  ;;  %362 = vrot.lane.b32.xlu1 %v255_v16, %s703_s30 }
 0x110   : > { %354 = vrot.lane.b32.xlu0 %v255_v16, %s704_s4 }
 0x114   : > { %370 = vrot.lane.b32.xlu0 %v255_v16, %s705_s5 }
 0x15e   : > { %v283_v31 = vpop.permute.xlu0 %282  ;;  %v267_v32 = vpop.permute.xlu1 %266 }
 0x15f   : > { %v272_v35 = vmul.f32 %v270_v27, %v267_v32  ;;  %v288_v42 = vmul.f32 %v286_v22, %v283_v31 }
 0x161   : > { %v273_v39 = vadd.f32 %v272_v35, %v265_v37 }
 0x162   : > { %v291_v33 = vpop.permute.xlu0 %290  ;;  %v275_v34 = vpop.permute.xlu1 %274 }
 0x163   : > { %v280_v38 = vmul.f32 %v278_v21, %v275_v34  ;;  %v296_v46 = vmul.f32 %v294_v29, %v291_v33 }
 0x165   : > { %v281_v41 = vadd.f32 %v280_v38, %v273_v39 }
 0x166   : > { %v299_v36 = vpop.permute.xlu0 %298 }
 0x167   : > { %v289_v45 = vadd.f32 %v288_v42, %v281_v41  ;;  %v304_v50 = vmul.f32 %v302_v23, %v299_v36 }
 0x169   : > { %v297_v48 = vadd.f32 %v296_v46, %v289_v45 }
 0x16a   : > { %v307_v40 = vpop.permute.xlu0 %306 }
 0x16b   : > { %v305_v52 = vadd.f32 %v304_v50, %v297_v48  ;;  %v312_v53 = vmul.f32 %v310_v24, %v307_v40 }
 0x16d   : > { %v313_v57 = vadd.f32 %v312_v53, %v305_v52 }
 0x16e   : > { %v315_v43 = vpop.permute.xlu0 %314 }
 0x16f   : > { %v342_v44 = vpop.permute.xlu1 %341  ;;  %v320_v55 = vmul.f32 %v318_v25, %v315_v43 }
 0x171   : > { %v321_v59 = vadd.f32 %v320_v55, %v313_v57 }
 0x172   : > { %v323_v47 = vpop.permute.xlu0 %322 }
 0x173   : > { %v328_v58 = vmul.f32 %v326_v28, %v323_v47 }
 0x174   : > { %v350_v49 = vpop.permute.xlu1 %349 }
 0x175   : > { %v329_v63 = vadd.f32 %v328_v58, %v321_v59 }
 0x176   : > { %v331_v51 = vpop.permute.xlu0 %330 }
 0x177   : > { %v336_v60 = vmul.f32 %v334_v30, %v331_v51 }
 0x179   : > { %v358_v54 = vpop.permute.xlu1 %357  ;;  %v337_v1 = vadd.f32 %v336_v60, %v329_v63 }
 0x17a   : > { %v339_v56 = vpop.permute.xlu0 %338 }
 0x17b   : > { %v344_v0 = vmul.f32 %v342_v44, %v339_v56 }
 0x17d   : > { %v345_v5 = vadd.f32 %v344_v0, %v337_v1 }
 0x17e   : > { %v347_v61 = vpop.permute.xlu0 %346  ;;  %v366_v62 = vpop.permute.xlu1 %365 }
 0x17f   : > { %v352_v2 = vmul.f32 %v350_v49, %v347_v61 }
 0x181   : > { %v353_v7 = vadd.f32 %v352_v2, %v345_v5 }
 0x182   : > { %v355_v3 = vpop.permute.xlu0 %354 }
 0x183   : > { %v374_v4 = vpop.permute.xlu1 %373  ;;  %v360_v6 = vmul.f32 %v358_v54, %v355_v3 }
 0x185   : > { %v361_v10 = vadd.f32 %v360_v6, %v353_v7 }
 0x186   : > { %v371_v8 = vpop.permute.xlu0 %370 }
 0x187   : > { %v363_v9 = vpop.permute.xlu1 %362  ;;  %v376_v12 = vmul.f32 %v374_v4, %v371_v8 }
 0x188   : > { %v368_v11 = vmul.f32 %v366_v62, %v363_v9 }
 0x18a   : > { %v369_v13 = vadd.f32 %v368_v11, %v361_v10 }
 0x18c   : > { %v377_v14 = vadd.f32 %v376_v12, %v369_v13 }
 0x18e   : > { %378 = vst [vmem:[%s174_s9] sm:$0xff] %v377_v14 }
 0x18f   : > { %621 = shalt.err (!%p618_p0)
}
 0x190   : > { %s622_s27 = scalar_lea.hbm %s391_s19, 128  ;;  %s626_s30 = scalar_lea.hbm %s855_s3, 256 }
 0x191   : > { %p623_p1 = scmp.ne.s32.totalorder %s391_s19, %s622_s27  ;;  %p627_p4 = scmp.lt.s32.totalorder %s391_s19, %s855_s3 }
 0x192   : > { %p628_p7 = scmp.lt.s32.totalorder %s626_s30, %s622_s27 }
 0x193   : > { %p624_p2 = pnand %p623_p1, %p765_p5 }
 0x194   : > { %p629_p8 = por %p628_p7, %p627_p4 }
 0x195   : > { %p625_p3 = pneg %p624_p2 }
 0x197   : > { %p630_p6 = pnand %p629_p8, %p625_p3 }
 0x199   : > { %633 = shalt.err (!%p630_p6)
}
 0x19a   : > { %489 = dma.vmem_to_hbm [thread:$0]  (%p765_p5), %s394_s10, 128, %s391_s19, %s380_s20  }
 0x19b PF: > { %p501_p9 = scmp.ge.s32.totalorder %s672_s15, 2  ;;  %s405_s6 = sand.u32 1, %s660_s12  }
 0x19c   : > { %p859_p10 = scmp.ne.s32.totalorder %s857_s23, 0  ;;  %s406_s7 = scalar_lea.sflag [#allocation4], %s405_s6 }
 0x19e   : > { %p496_p11 = pnand %p501_p9, %p859_p10 }
 0x1a0   : > { %p497_p12 = pneg %p496_p11 }
 0x1a2   : > { %655 = dma.done.wait (%p497_p12), %s406_s7, 128  }
 0x1a3   : > { %657 = vsyncadd (%p497_p12), %s406_s7, 4294967168  ;;  %p14_p13 = scmp.ge.s32.totalorder %s752_s18, 4   ;;  %s860_s12 = smov %s664_s13 }
 0x1a4   : > { %s861_s13 = smov %s668_s14  ;;  %s862_s14 = smov %s763_s21 }
 0x1a5   : > { %s863_s15 = smov %s752_s18  ;;  %16 = sbr.rel (!%p14_p13) target bundleno = 4 (0x4), region = 72 }
 0x1aa   :  { %411 = vsyncpa [#allocation3], 1 }
 0x1ab   :  { %413 = vsyncpa [#allocation3 + $0x1], 1 }
 0x1ac   :  { %414 = vsyncpa [#allocation4], 1 }
 0x1ad   :  { %416 = vsyncpa [#allocation4 + $0x1], 1 }

</bundles_post_ra>
